<compile_context>
chip_gen: v7x
topology: tpu7x:2x2x1
jax: 0.10.0
libtpu: 0.0.40
codegen_flags: <defaults>
</compile_context>

<pallas_src>
import functools

import jax
import jax.numpy as jnp
import numpy as np
from jax.experimental import pallas as pl
from jax.experimental.pallas import tpu as pltpu


# ----------------------------------------------------------------------------
# Pallas kernels
# ----------------------------------------------------------------------------
def _matmul_bias_kernel(a_ref, b_ref, bias_ref, o_ref, *, relu):
    # bf16 x bf16 -> f32 on the MXU; bias + optional ReLU epilogue in f32.
    acc = jnp.dot(a_ref[...], b_ref[...], preferred_element_type=jnp.float32)
    acc = acc + bias_ref[...]
    if relu:
        acc = jnp.maximum(acc, 0.0)
    o_ref[...] = acc


def _max4_kernel(a_ref, b_ref, c_ref, d_ref, o_ref):
    o_ref[...] = jnp.maximum(jnp.maximum(a_ref[...], b_ref[...]),
                             jnp.maximum(c_ref[...], d_ref[...]))


def _round_up(x, m):
    return ((x + m - 1) // m) * m


def _choose_tm(M):
    """Largest divisor of M that is a multiple of 16 and <= 256; prefer >= 2 grid steps."""
    best = 16
    for tm in range(16, min(M, 256) + 1, 16):
        if M % tm == 0:
            best = tm
    if best == M and M >= 32 and (M // 2) % 16 == 0:
        best = M // 2   # give the second TensorCore (v7x) something to do
    return best


def matmul_bias(a, layer, *, relu=False):
    """a: (M, K).  layer: {'w': (K, N_pad=128k) bf16, 'b': (1, N_pad) f32, 'n': true N}."""
    w, bias, n = layer["w"], layer["b"], layer["n"]
    M, K = a.shape
    Kw, Np = w.shape
    assert K == Kw, (K, Kw)
    a = a.astype(jnp.bfloat16)

    M0 = M
    if M % 16:  # only the fc (M = batch) hits this; tiny pad instead of odd block shapes
        Mp = _round_up(M, 16)
        a = jnp.pad(a, ((0, Mp - M), (0, 0)))
        M = Mp
    tm = _choose_tm(M)

    out = pl.pallas_call(
        functools.partial(_matmul_bias_kernel, relu=relu),
        out_shape=jax.ShapeDtypeStruct((M, Np), jnp.float32),
        grid=(M // tm,),
        in_specs=[
            pl.BlockSpec((tm, K), lambda i: (i, 0)),    # A tile marches over M
            pl.BlockSpec((K, Np), lambda i: (0, 0)),    # B stays resident
            pl.BlockSpec((1, Np), lambda i: (0, 0)),    # bias stays resident
        ],
        out_specs=pl.BlockSpec((tm, Np), lambda i: (i, 0)),   # lane-dense 128-wide stores
        compiler_params=pltpu.CompilerParams(dimension_semantics=("parallel",)),
    )(a, w, bias)
    return out[:M0, :n]


def maxpool2x2(x):
    """nn.MaxPool2d(2) on NHWC via a single 4-input elementwise-max kernel."""
    N, H, W, C = x.shape
    oh, ow = H // 2, W // 2
    wins = [x[:, i::2, j::2, :].reshape(N * oh * ow, C) for i in range(2) for j in range(2)]
    out = pl.pallas_call(
        _max4_kernel,
        out_shape=jax.ShapeDtypeStruct((N * oh * ow, C), x.dtype),
        in_specs=[pl.BlockSpec(memory_space=pltpu.MemorySpace.VMEM)] * 4,
        out_specs=pl.BlockSpec(memory_space=pltpu.MemorySpace.VMEM),
    )(*wins)
    return out.reshape(N, oh, ow, C)


# ----------------------------------------------------------------------------
# Conv wrapper (im2col glue in plain JAX, matmul in Pallas)
# ----------------------------------------------------------------------------
def _im2col(x, kh, kw, pad):
    # x: (N, H, W, C) NHWC, stride 1.  K ordering = (tap_row, tap_col, channel).
    if pad > 0:
        x = jnp.pad(x, ((0, 0), (pad, pad), (pad, pad), (0, 0)))
    N, H, W, C = x.shape
    oh, ow = H - kh + 1, W - kw + 1
    cols = [x[:, i:i + oh, j:j + ow, :] for i in range(kh) for j in range(kw)]
    p = jnp.concatenate(cols, axis=-1)                    # (N, oh, ow, kh*kw*C)
    return p.reshape(N * oh * ow, kh * kw * C), (N, oh, ow)


def conv2d_mm(x, layer, kh, kw, *, pad=0, relu=False):
    x = x.astype(jnp.bfloat16)                            # halve im2col / A-tile bytes
    a, (N, oh, ow) = _im2col(x, kh, kw, pad)
    out = matmul_bias(a, layer, relu=relu)
    return out.reshape(N, oh, ow, layer["n"])


# ----------------------------------------------------------------------------
# Parameter initialization (PyTorch-style fan-in init, fused + lane-dense at init)
# ----------------------------------------------------------------------------
def _uniform(key, shape, bound):
    return jax.random.uniform(key, shape, jnp.float32, -bound, bound)


def _init_conv_raw(key, oc, ic, kh, kw):
    k1, k2 = jax.random.split(key)
    bound = 1.0 / np.sqrt(ic * kh * kw)
    return _uniform(k1, (oc, ic, kh, kw), bound), _uniform(k2, (oc,), bound)


def _to_wmat(w):
    # torch (OC, IC, KH, KW) -> (KH*KW*IC, OC), matching im2col K ordering.
    OC, IC, KH, KW = w.shape
    return jnp.transpose(w, (2, 3, 1, 0)).reshape(KH * KW * IC, OC)


def _make_layer(wmat, bias):
    # Lane-dense: pad output channels to a multiple of 128 once, bf16 MXU weights, f32 bias.
    K, N = wmat.shape
    Np = _round_up(N, 128)
    w = jnp.pad(wmat, ((0, 0), (0, Np - N))).astype(jnp.bfloat16)
    b = jnp.pad(bias, (0, Np - N)).reshape(1, Np).astype(jnp.float32)
    return {"w": w, "b": b, "n": N}


def _init_inception(key, c):
    ks = jax.random.split(key, 7)
    b1_w, b1_b = _init_conv_raw(ks[0], 24, c, 1, 1)     # follows AvgPool2d(3,1,1)
    b2_w, b2_b = _init_conv_raw(ks[1], 16, c, 1, 1)
    b3a_w, b3a_b = _init_conv_raw(ks[2], 16, c, 1, 1)
    b3b_w, b3b_b = _init_conv_raw(ks[3], 24, 16, 5, 5)  # pad 2
    b4a_w, b4a_b = _init_conv_raw(ks[4], 16, c, 1, 1)
    b4b_w, b4b_b = _init_conv_raw(ks[5], 24, 16, 3, 3)  # pad 1
    b4c_w, b4c_b = _init_conv_raw(ks[6], 24, 24, 3, 3)  # pad 1

    # Fused "stem": ONE 3x3 conv (pad=1) on x producing [b1(24) | b2(16) | b3a(16) | b4a(16)].
    #   AvgPool(3,1,1)+Conv1x1 == 3x3 conv with w/9 at every tap (count_include_pad=True);
    #   the 1x1 convs sit at the center tap of a zero 3x3 kernel.
    stem_w = jnp.zeros((72, c, 3, 3), jnp.float32)
    stem_w = stem_w.at[0:24].set(jnp.broadcast_to(b1_w[:, :, 0:1, 0:1] / 9.0, (24, c, 3, 3)))
    stem_w = stem_w.at[24:40, :, 1, 1].set(b2_w[:, :, 0, 0])
    stem_w = stem_w.at[40:56, :, 1, 1].set(b3a_w[:, :, 0, 0])
    stem_w = stem_w.at[56:72, :, 1, 1].set(b4a_w[:, :, 0, 0])
    stem_b = jnp.concatenate([b1_b, b2_b, b3a_b, b4a_b])

    # Fused "mid": ONE 5x5 conv (pad=2) on concat([t3, t4]) producing [b3b(24) | b4b(24)].
    #   b3b's 5x5 reads channels 0:16; b4b's 3x3 (pad=1) is embedded at the center of a
    #   zero 5x5 kernel over channels 16:32 (identical result with pad=2).
    mid_w = jnp.zeros((48, 32, 5, 5), jnp.float32)
    mid_w = mid_w.at[0:24, 0:16].set(b3b_w)
    mid_w = mid_w.at[24:48, 16:32, 1:4, 1:4].set(b4b_w)
    mid_b = jnp.concatenate([b3b_b, b4b_b])

    return {
        "stem": _make_layer(_to_wmat(stem_w), stem_b),
        "mid": _make_layer(_to_wmat(mid_w), mid_b),
        "b4c": _make_layer(_to_wmat(b4c_w), b4c_b),
    }


def init_convnet_params(key):
    ks = jax.random.split(key, 5)
    conv1_w, conv1_b = _init_conv_raw(ks[0], 10, 1, 5, 5)
    conv2_w, conv2_b = _init_conv_raw(ks[2], 20, 88, 5, 5)
    kf1, kf2 = jax.random.split(ks[4])
    fc_bound = 1.0 / np.sqrt(88 * 4 * 4)
    fc_w = _uniform(kf1, (10, 88 * 4 * 4), fc_bound)
    fc_b = _uniform(kf2, (10,), fc_bound)
    return {
        "conv1": _make_layer(_to_wmat(conv1_w), conv1_b),
        "inc1": _init_inception(ks[1], 10),
        "conv2": _make_layer(_to_wmat(conv2_w), conv2_b),
        "inc2": _init_inception(ks[3], 20),
        "fc": _make_layer(fc_w.T, fc_b),
    }


# ----------------------------------------------------------------------------
# Forward pass
# ----------------------------------------------------------------------------
def inception_forward(p, x):
    # One fused 3x3 conv for block1 + all three 1x1 stems (all read x).
    stem = conv2d_mm(x, p["stem"], 3, 3, pad=1)          # (N, H, W, 72)
    x1 = stem[..., 0:24]                                 # block1 output
    x2 = stem[..., 24:40]                                # block2 output
    t3 = stem[..., 40:56]                                # block3 1x1 output
    t4 = stem[..., 56:72]                                # block4 1x1 output
    # One fused 5x5 conv for block3's 5x5 and block4's middle 3x3.
    mid = conv2d_mm(jnp.concatenate([t3, t4], axis=-1), p["mid"], 5, 5, pad=2)  # (N,H,W,48)
    x3 = mid[..., 0:24]
    t4b = mid[..., 24:48]
    x4 = conv2d_mm(t4b, p["b4c"], 3, 3, pad=1)           # (N, H, W, 24)
    # torch.cat(dim=1) on NCHW == channel (last-axis) concat in NHWC, same order.
    return jnp.concatenate([x1, x2, x3, x4], axis=-1)


def convnet_forward(params, x_nchw):
    x = jnp.transpose(x_nchw, (0, 2, 3, 1)).astype(jnp.float32)                 # NHWC
    # Conv1 block: conv5x5 (1->10) + fused ReLU + MaxPool(2) + Inception(10)
    x = conv2d_mm(x, params["conv1"], 5, 5, pad=0, relu=True)                   # (N,24,24,10)
    x = maxpool2x2(x)                                                           # (N,12,12,10)
    x = inception_forward(params["inc1"], x)                                    # (N,12,12,88)
    # Conv2 block: conv5x5 (88->20) + fused ReLU + MaxPool(2) + Inception(20)
    x = conv2d_mm(x, params["conv2"], 5, 5, pad=0, relu=True)                   # (N,8,8,20)
    x = maxpool2x2(x)                                                           # (N,4,4,20)
    x = inception_forward(params["inc2"], x)                                    # (N,4,4,88)
    # Flatten in NCHW order to match PyTorch x.view(N, -1)
    N = x.shape[0]
    flat = jnp.transpose(x, (0, 3, 1, 2)).reshape(N, -1)                        # (N, 1408)
    return matmul_bias(flat, params["fc"], relu=False)                          # (N, 10)


if __name__ == "__main__":
    key = jax.random.PRNGKey(0)
    k_params, k_x = jax.random.split(key)
    params = init_convnet_params(k_params)
    # ConvNet's fc layer (88*4*4) implies a 1x28x28 (MNIST-style) input.
    x = jax.random.normal(k_x, (2, 1, 28, 28), dtype=jnp.float32)
    out = convnet_forward(params, x)
    out = jax.block_until_ready(out)
    assert out.shape == (2, 10), out.shape
    print("KERNEL_OK")
</pallas_src>

<mosaic_0001>
module attributes {stable_mosaic.version = 11 : i64} {
  func.func @_matmul_bias_kernel(%arg0: i32, %arg1: memref<192x25xbf16, #tpu.memory_space<vmem>>, %arg2: memref<25x128xbf16, #tpu.memory_space<vmem>>, %arg3: memref<1x128xf32, #tpu.memory_space<vmem>>, %arg4: memref<192x128xf32, #tpu.memory_space<vmem>>) attributes {dimension_semantics = [#tpu.dimension_semantics<parallel>], iteration_bounds = array<i64: 6>, scalar_prefetch = 0 : i64, scratch_operands = 0 : i64, tpu.core_type = #tpu.core_type<tc>, window_params = [{transform_indices = @transform_0, window_bounds = array<i64: 192, 25>}, {pipeline_mode = #tpu.pipeline_mode<synchronous>, transform_indices = @transform_1, window_bounds = array<i64: 25, 128>}, {pipeline_mode = #tpu.pipeline_mode<synchronous>, transform_indices = @transform_2, window_bounds = array<i64: 1, 128>}, {transform_indices = @transform_3, window_bounds = array<i64: 192, 128>}]} {
    %c0 = arith.constant 0 : index
    %c0_0 = arith.constant 0 : index
    %0 = vector.load %arg1[%c0, %c0_0] : memref<192x25xbf16, #tpu.memory_space<vmem>>, vector<192x25xbf16>
    %c0_1 = arith.constant 0 : index
    %c0_2 = arith.constant 0 : index
    %1 = vector.load %arg2[%c0_1, %c0_2] : memref<25x128xbf16, #tpu.memory_space<vmem>>, vector<25x128xbf16>
    %cst = arith.constant dense<0.000000e+00> : vector<192x128xf32>
    %2 = tpu.matmul %0, %1, %cst {dimension_numbers = #tpu.dot_dimension_numbers<[1], [0], [0], [1], [0, 0, 1, 1], [], []>} : vector<192x25xbf16>, vector<25x128xbf16>, vector<192x128xf32> -> vector<192x128xf32>
    %c0_3 = arith.constant 0 : index
    %c0_4 = arith.constant 0 : index
    %3 = vector.load %arg3[%c0_3, %c0_4] : memref<1x128xf32, #tpu.memory_space<vmem>>, vector<1x128xf32>
    %4 = vector.broadcast %3 : vector<1x128xf32> to vector<192x128xf32>
    %5 = arith.addf %2, %4 : vector<192x128xf32>
    %cst_5 = arith.constant 0.000000e+00 : f32
    %6 = vector.broadcast %cst_5 : f32 to vector<192x128xf32>
    %7 = arith.maximumf %5, %6 : vector<192x128xf32>
    %c0_6 = arith.constant 0 : index
    %c0_7 = arith.constant 0 : index
    %8 = vector.load %arg4[%c0_6, %c0_7] : memref<192x128xf32, #tpu.memory_space<vmem>>, vector<192x128xf32>
    tpu.vector_store %arg4[%c0_6, %c0_7], %7 {strides = array<i32>} : memref<192x128xf32, #tpu.memory_space<vmem>>, vector<192x128xf32>,
    return
  }
  func.func @transform_0(%arg0: i32) -> (i32, i32) {
    %c0_i32 = arith.constant 0 : i32
    %c0_i32_0 = arith.constant 0 : i32
    return %arg0, %c0_i32 : i32, i32
  }
  func.func @transform_1(%arg0: i32) -> (i32, i32) {
    %c0_i32 = arith.constant 0 : i32
    %c0_i32_0 = arith.constant 0 : i32
    %c0_i32_1 = arith.constant 0 : i32
    return %c0_i32, %c0_i32_0 : i32, i32
  }
  func.func @transform_2(%arg0: i32) -> (i32, i32) {
    %c0_i32 = arith.constant 0 : i32
    %c0_i32_0 = arith.constant 0 : i32
    %c0_i32_1 = arith.constant 0 : i32
    return %c0_i32, %c0_i32_0 : i32, i32
  }
  func.func @transform_3(%arg0: i32) -> (i32, i32) {
    %c0_i32 = arith.constant 0 : i32
    %c0_i32_0 = arith.constant 0 : i32
    return %arg0, %c0_i32 : i32, i32
  }
}

</mosaic_0001>

<bundles_post_ra>
// kernel: tpu_custom_call.1
= control target key start
LH: loop header
LB: loop body
LE: loop exit
PB: predicated region body
PF: predicated region fallthrough
CT: control target
= control target key end

     0   :  { %8 = vsyncpa [#allocation3], 0  ;;  %s983_s0 = inlined_call_operand.vmem [shape: bf16[1152,25], index: 0, kind: input, shape index: {}]   ;;  %s984_s1 = inlined_call_operand.vmem [shape: bf16[25,128], index: 1, kind: input, shape index: {}]   ;;  %s985_s2 = inlined_call_operand.vmem [shape: f32[1,128], index: 2, kind: input, shape index: {}]   ;;  %s986_s3 = inlined_call_operand.hbm [shape: f32[1152,128], index: 3, kind: output, shape index: {}]  }
   0x1   :  { %10 = vsyncpa [#allocation3 + $0x1], 0  ;;  %s803_s12 = smov 0   ;;  %s805_s13 = smov 0  }
   0x2   :  { %s807_s14 = smov 0   ;;  %s809_s15 = smov 0  }
   0x3 LB: > { %s824_s16 = sadd.s32 4294967295, %s777_s15   ;;  %s576_s17 = sadd.s32 4294967294, %s777_s15   ;;  %s777_s15 = sphi %s809_s15, %s992_s15   ;;  %s773_s14 = sphi %s807_s14, %s991_s14   ;;  %s769_s13 = sphi %s805_s13, %s990_s13   ;;  %s765_s12 = sphi %s803_s12, %s989_s12  }
   0x4   : > { %s828_s18 = sadd.s32 1, %s777_s15   ;;  %s91_s19 = sadd.s32 1, %s773_s14 }
   0x5   : > { %s88_s20 = ssub.s32 %s777_s15, %s828_s18  ;;  %p101_p0 = scmp.ne.s32.totalorder %s773_s14, %s769_s13 }
   0x6   : > { %p89_p1 = scmp.eq.s32.totalorder %s88_s20, 0  ;;  %p102_p2 = scmp.eq.s32.totalorder %s824_s16, 5 }
   0x7   : > { %p107_p3 = scmp.ne.s32.totalorder %s769_s13, %s765_s12  ;;  %p108_p4 = scmp.eq.s32.totalorder %s576_s17, 5 }
   0x8   : > { %s839_s21 = scalar_select %p89_p1, %s773_s14, %s91_s19  }
   0x9   : > { %p841_p5 = por %p102_p2, %p101_p0  ;;  %p845_p6 = por %p108_p4, %p107_p3 }
   0xa   : > { %p579_p7 = scmp.ge.s32.totalorder %s777_s15, 1  ;;  %p141_p8 = scmp.lt.s32.totalorder %s777_s15, 7 }
   0xc   : > { %p142_p9 = pnand %p579_p7, %p141_p8 }
   0xd   : > { %v701_v0 = vld [vmem:[%s984_s1] sm:$0xff] (!%p142_p9)   ;;  %vm316_vm0 = vcmask (!%p142_p9), 1043456   ;;  %v702_v1 = vld [vmem:[%s984_s1 + $0x8] sm:$0x1f] (!%p142_p9)   ;;  %vm317_vm1 = vcmask (!%p142_p9), 1044480   ;;  %s165_s28 = smul.u32 (!%p142_p9), 24, %s824_s16 }
   0xe   : > { %145 = sbr.rel (%p142_p9) target bundleno = 276 (0x114), region = 32  ;;  %626 = vmatprep.subr.bf16.mxu0 (!%p142_p9), %v701_v0  ;;  %654 = vmatprep.subr.bf16.mxu1 (!%p142_p9), %v701_v0  ;;  %v779_v2 = vmov (!%p142_p9), 65535   ;;  %vm279_vm2 = vcmask (!%p142_p9), 203776   ;;  %s162_s6 = sand.u32 (!%p142_p9), 1, %s769_s13   ;;  %v879_v18 = vld [vmem:[%s985_s2] ss:$0 sm:$0xff] (!%p142_p9) }
   0xf   : > { %627 = vmatpush3.bf16.msra.mxu0 (!%p142_p9), %v701_v0  ;;  %656 = vmatpush3.bf16.msra.mxu1 (!%p142_p9), %v701_v0  ;;  %v318_v3 = vsel (!%p142_p9), %vm316_vm0, 4294967295, %v779_v2  ;;  %p166_p10 = scmp.lt.s32.totalorder (!%p142_p9), %s165_s28, 143  ;;  %s658_s7 = smul.u32 (!%p142_p9), 192, %s162_s6 }
  0x10   : > { %v319_v4 = vsel (!%p142_p9), %vm317_vm1, %v318_v3, 0  ;;  %s611_s11 = smul.u32 (!%p142_p9), 3072, %s824_s16  ;;  %s942_s24 = scalar_lea.sflag (!%p142_p9), [#allocation3], %s162_s6 }
  0x11   : > { %v321_v5 = vand.u32 (!%p142_p9), %v702_v1, %v319_v4  ;;  %s888_s10 = scalar_lea.vmem (!%p142_p9), [#allocation2], %s658_s7  ;;  %s780_s26 = smov (!%p142_p9), [#allocation2]  }
  0x12   : > { %s514_s17 = sshll.u32 (!%p142_p9), %s888_s10, 4  ;;  %s931_s20 = scalar_lea.hbm (!%p142_p9), %s986_s3, %s611_s11  ;;  %s933_s17 = int_to_ptr.vmem [resolvable:$true] %s514_s17 }
  0x13   : > { %628 = vmatprep.subr.bf16.mxu0 (!%p142_p9), %v321_v5  ;;  %655 = vmatprep.subr.bf16.mxu1 (!%p142_p9), %v321_v5  ;;  %s715_s25 = scalar_lea.vmem (!%p142_p9), %s933_s17, 3072  ;;  %s719_s27 = sshll.u32 (!%p142_p9), %s780_s26, 4  ;;  %s720_s27 = int_to_ptr.vmem [resolvable:$false] %s719_s27 }
  0x14   : > { %629 = vmatpush3.bf16.msra.mxu0 (!%p142_p9), %v321_v5  ;;  %657 = vmatpush3.bf16.msra.mxu1 (!%p142_p9), %v321_v5  ;;  %p716_p11 = scmp.ne.s32.totalorder (!%p142_p9), %s933_s17, %s715_s25  ;;  %p722_p0 = scmp.lt.s32.totalorder (!%p142_p9), %s933_s17, %s720_s27 }
  0x15   : > { %s994_s28 = smov (!%p166_p10, %s165_s28), 143 }
  0x16   : > { %s580_s29 = sshll.u32 %s994_s28, 2  ;;  %p717_p12 = pnand %p716_p11, %p841_p5 }
  0x17   : > { %s169_s5 = scalar_lea.vmem %s983_s0, %s580_s29  ;;  %s721_s28 = scalar_lea.vmem %s720_s27, 6144 }
  0x18   : > { %v703_v6 = vld [vmem:[%s169_s5] sm:$0xff]   ;;  %v704_v7 = vld [vmem:[%s169_s5 + $0x30] sm:$0xff]   ;;  %v705_v8 = vld [vmem:[%s169_s5 + $0x8] sm:$0xff]   ;;  %p718_p13 = pneg %p717_p12  ;;  %p723_p1 = scmp.lt.s32.totalorder %s721_s28, %s715_s25 }
  0x19   : > { %630 = vmatprep.mubr.msk.bf16.mxu0 %vm279_vm2, %v703_v6  ;;  %642 = vmatprep.mubr.msk.bf16.mxu1 %vm279_vm2, %v704_v7  ;;  %v706_v9 = vld [vmem:[%s169_s5 + $0x38] sm:$0xff]   ;;  %v707_v10 = vld [vmem:[%s169_s5 + $0x10] sm:$0xff]   ;;  %v708_v11 = vld [vmem:[%s169_s5 + $0x40] sm:$0xff]  }
  0x1a   : > { %631 = vmatmul.mubr.msk.bf16.vlgmr.msra.gmra.mrb[0].mxu0 %vm279_vm2, %v705_v8  ;;  %643 = vmatmul.mubr.msk.bf16.vlgmr.msra.gmra.mrb[0].mxu1 %vm279_vm2, %v706_v9  ;;  %v709_v12 = vld [vmem:[%s169_s5 + $0x18] sm:$0xff]   ;;  %v710_v13 = vld [vmem:[%s169_s5 + $0x48] sm:$0xff]   ;;  %v711_v14 = vld [vmem:[%s169_s5 + $0x20] sm:$0xff]   ;;  %p724_p2 = por %p723_p1, %p722_p0 }
  0x1b   : > { %634 = vmatprep.mubr.msk.bf16.mxu0 %vm279_vm2, %v707_v10  ;;  %646 = vmatprep.mubr.msk.bf16.mxu1 %vm279_vm2, %v708_v11  ;;  %v712_v15 = vld [vmem:[%s169_s5 + $0x50] sm:$0xff]   ;;  %v713_v16 = vld [vmem:[%s169_s5 + $0x28] sm:$0xff]   ;;  %v714_v17 = vld [vmem:[%s169_s5 + $0x58] sm:$0xff]  }
  0x1c   : > { %p725_p3 = pnand %p724_p2, %p718_p13 }
  0x22   : > { %635 = vmatmul.mubr.msk.bf16.gmra.mrb[4].mxu0 %vm279_vm2, %v709_v12  ;;  %647 = vmatmul.mubr.msk.bf16.gmra.mrb[4].mxu1 %vm279_vm2, %v710_v13 }
  0x23   : > { %638 = vmatprep.mubr.msk.bf16.mxu0 %vm279_vm2, %v711_v14  ;;  %650 = vmatprep.mubr.msk.bf16.mxu1 %vm279_vm2, %v712_v15 }
  0x2a   : > { %639 = vmatmul.mubr.msk.bf16.gmra.mrb[8].mxu0 %vm279_vm2, %v713_v16  ;;  %651 = vmatmul.mubr.msk.bf16.gmra.mrb[8].mxu1 %vm279_vm2, %v714_v17 }
  0xed   : > { %v632_v19 = vpop.f32.mrb[0].mxu0  ;;  %v644_v21 = vpop.f32.mrb[0].mxu1 }
  0xee   : > { %v366_v20 = vadd.f32 %v632_v19, %v879_v18  ;;  %v357_v22 = vpop.f32.mrb[1].mxu0  ;;  %v414_v23 = vadd.f32 %v644_v21, %v879_v18  ;;  %v405_v25 = vpop.f32.mrb[1].mxu1 }
  0xef   : > { %v358_v24 = vadd.f32 %v879_v18, %v357_v22  ;;  %v633_v26 = vpop.f32.mrb[2].mxu0  ;;  %v406_v28 = vadd.f32 %v879_v18, %v405_v25  ;;  %v645_v30 = vpop.f32.mrb[2].mxu1 }
  0xf0   : > { %v454_v27 = vmax.f32 %v366_v20, 0.0  ;;  %v369_v29 = vadd.f32 %v633_v26, %v879_v18  ;;  %v360_v31 = vpop.f32.mrb[3].mxu0  ;;  %v466_v32 = vmax.f32 %v414_v23, 0.0  ;;  %v417_v34 = vadd.f32 %v645_v30, %v879_v18  ;;  %v408_v36 = vpop.f32.mrb[3].mxu1 }
  0xf1   : > { %v452_v33 = vmax.f32 %v358_v24, 0.0  ;;  %v361_v35 = vadd.f32 %v879_v18, %v360_v31  ;;  %v464_v37 = vmax.f32 %v406_v28, 0.0  ;;  %v409_v39 = vadd.f32 %v879_v18, %v408_v36 }
  0xf2   : > { %478 = vst [vmem:[%s888_s10 + $0x10] sm:$0xff] %v454_v27  ;;  %v455_v38 = vmax.f32 %v369_v29, 0.0  ;;  %490 = vst [vmem:[%s888_s10 + $0x70] sm:$0xff] %v466_v32  ;;  %v467_v40 = vmax.f32 %v417_v34, 0.0 }
  0xf3   : > { %476 = vst [vmem:[%s888_s10] sm:$0xff] %v452_v33  ;;  %v453_v41 = vmax.f32 %v361_v35, 0.0  ;;  %488 = vst [vmem:[%s888_s10 + $0x60] sm:$0xff] %v464_v37  ;;  %v465_v42 = vmax.f32 %v409_v39, 0.0 }
  0xf4   : > { %479 = vst [vmem:[%s888_s10 + $0x18] sm:$0xff] %v455_v38  ;;  %491 = vst [vmem:[%s888_s10 + $0x78] sm:$0xff] %v467_v40 }
  0xf5   : > { %477 = vst [vmem:[%s888_s10 + $0x8] sm:$0xff] %v453_v41  ;;  %v636_v43 = vpop.f32.mrb[4].mxu0  ;;  %489 = vst [vmem:[%s888_s10 + $0x68] sm:$0xff] %v465_v42  ;;  %v648_v45 = vpop.f32.mrb[4].mxu1 }
  0xf6   : > { %v382_v44 = vadd.f32 %v636_v43, %v879_v18  ;;  %v373_v46 = vpop.f32.mrb[5].mxu0  ;;  %v430_v47 = vadd.f32 %v648_v45, %v879_v18  ;;  %v421_v49 = vpop.f32.mrb[5].mxu1 }
  0xf7   : > { %v374_v48 = vadd.f32 %v879_v18, %v373_v46  ;;  %v637_v50 = vpop.f32.mrb[6].mxu0  ;;  %v422_v52 = vadd.f32 %v879_v18, %v421_v49  ;;  %v649_v54 = vpop.f32.mrb[6].mxu1 }
  0xf8   : > { %v458_v51 = vmax.f32 %v382_v44, 0.0  ;;  %v385_v53 = vadd.f32 %v637_v50, %v879_v18  ;;  %v376_v55 = vpop.f32.mrb[7].mxu0  ;;  %v470_v56 = vmax.f32 %v430_v47, 0.0  ;;  %v433_v58 = vadd.f32 %v649_v54, %v879_v18  ;;  %v424_v60 = vpop.f32.mrb[7].mxu1 }
  0xf9   : > { %v456_v57 = vmax.f32 %v374_v48, 0.0  ;;  %v377_v59 = vadd.f32 %v879_v18, %v376_v55  ;;  %v468_v61 = vmax.f32 %v422_v52, 0.0  ;;  %v425_v63 = vadd.f32 %v879_v18, %v424_v60 }
  0xfa   : > { %482 = vst [vmem:[%s888_s10 + $0x30] sm:$0xff] %v458_v51  ;;  %v459_v62 = vmax.f32 %v385_v53, 0.0  ;;  %494 = vst [vmem:[%s888_s10 + $0x90] sm:$0xff] %v470_v56  ;;  %v471_v0 = vmax.f32 %v433_v58, 0.0 }
  0xfb   : > { %480 = vst [vmem:[%s888_s10 + $0x20] sm:$0xff] %v456_v57  ;;  %v457_v1 = vmax.f32 %v377_v59, 0.0  ;;  %492 = vst [vmem:[%s888_s10 + $0x80] sm:$0xff] %v468_v61  ;;  %v469_v2 = vmax.f32 %v425_v63, 0.0 }
  0xfc   : > { %483 = vst [vmem:[%s888_s10 + $0x38] sm:$0xff] %v459_v62  ;;  %495 = vst [vmem:[%s888_s10 + $0x98] sm:$0xff] %v471_v0 }
  0xfd   : > { %481 = vst [vmem:[%s888_s10 + $0x28] sm:$0xff] %v457_v1  ;;  %v640_v3 = vpop.f32.mrb[8].mxu0  ;;  %493 = vst [vmem:[%s888_s10 + $0x88] sm:$0xff] %v469_v2  ;;  %v652_v5 = vpop.f32.mrb[8].mxu1 }
  0xfe   : > { %v398_v4 = vadd.f32 %v640_v3, %v879_v18  ;;  %v389_v6 = vpop.f32.mrb[9].mxu0  ;;  %v446_v7 = vadd.f32 %v652_v5, %v879_v18  ;;  %v437_v9 = vpop.f32.mrb[9].mxu1 }
  0xff   : > { %v390_v8 = vadd.f32 %v879_v18, %v389_v6  ;;  %v641_v10 = vpop.f32.mrb[10].mxu0  ;;  %v438_v12 = vadd.f32 %v879_v18, %v437_v9  ;;  %v653_v14 = vpop.f32.mrb[10].mxu1 }
 0x100   : > { %v462_v11 = vmax.f32 %v398_v4, 0.0  ;;  %v401_v13 = vadd.f32 %v641_v10, %v879_v18  ;;  %v392_v15 = vpop.f32.mrb[11].mxu0  ;;  %v474_v16 = vmax.f32 %v446_v7, 0.0  ;;  %v449_v19 = vadd.f32 %v653_v14, %v879_v18  ;;  %v440_v21 = vpop.f32.mrb[11].mxu1 }
 0x101   : > { %v460_v17 = vmax.f32 %v390_v8, 0.0  ;;  %v393_v20 = vadd.f32 %v879_v18, %v392_v15  ;;  %v472_v22 = vmax.f32 %v438_v12, 0.0  ;;  %v441_v24 = vadd.f32 %v879_v18, %v440_v21 }
 0x102   : > { %486 = vst [vmem:[%s888_s10 + $0x50] sm:$0xff] %v462_v11  ;;  %v463_v23 = vmax.f32 %v401_v13, 0.0  ;;  %498 = vst [vmem:[%s888_s10 + $0xb0] sm:$0xff] %v474_v16  ;;  %v475_v25 = vmax.f32 %v449_v19, 0.0 }
 0x103   : > { %484 = vst [vmem:[%s888_s10 + $0x40] sm:$0xff] %v460_v17  ;;  %v461_v26 = vmax.f32 %v393_v20, 0.0  ;;  %496 = vst [vmem:[%s888_s10 + $0xa0] sm:$0xff] %v472_v22  ;;  %v473_v27 = vmax.f32 %v441_v24, 0.0 }
 0x104   : > { %487 = vst [vmem:[%s888_s10 + $0x58] sm:$0xff] %v463_v23  ;;  %499 = vst [vmem:[%s888_s10 + $0xb8] sm:$0xff] %v475_v25 }
 0x105   : > { %485 = vst [vmem:[%s888_s10 + $0x48] sm:$0xff] %v461_v26  ;;  %497 = vst [vmem:[%s888_s10 + $0xa8] sm:$0xff] %v473_v27 }
 0x106   : > { %728 = shalt.err (!%p725_p3)
}
 0x107   : > { %s729_s29 = scalar_lea.hbm %s931_s20, 3072  ;;  %s733_s5 = scalar_lea.hbm %s986_s3, 18432 }
 0x108   : > { %p730_p4 = scmp.ne.s32.totalorder %s931_s20, %s729_s29  ;;  %p734_p9 = scmp.lt.u32.totalorder %s931_s20, %s986_s3 }
 0x109   : > { %p735_p10 = scmp.lt.u32.totalorder %s733_s5, %s729_s29  ;;  %p737_p12 = scmp.lt.u32.totalorder %s729_s29, %s931_s20 }
 0x10a   : > { %p731_p7 = pnand %p730_p4, %p841_p5 }
 0x10b   : > { %p736_p11 = por %p735_p10, %p734_p9 }
 0x10c   : > { %p732_p8 = pneg %p731_p7 }
 0x10d   : > { %p738_p13 = por %p737_p12, %p736_p11 }
 0x10f   : > { %p739_p0 = pnand %p738_p13, %p732_p8 }
 0x111   : > { %742 = shalt.err (!%p739_p0)
}
 0x112   : > { %s781_s8 = smov 128   ;;  %s782_s9 = smov 8  }
 0x113   : > { %659 = dma.vmem_to_hbm [thread:$0]  (%p841_p5), %s933_s17, 3072, %s931_s20, %s942_s24, %s781_s8, %s781_s8, %s782_s9  }
 0x114 PF: > { %p665_p1 = scmp.ge.s32.totalorder %s777_s15, 2  ;;  %s529_s10 = sand.u32 1, %s765_s12  }
 0x115   : > { %s530_s11 = scalar_lea.sflag [#allocation3], %s529_s10 }
 0x116   : > { %p662_p2 = pnand %p665_p1, %p845_p6 }
 0x118   : > { %760 = dma.done.wait (!%p662_p2), %s530_s11, 3072  }
 0x119   : > { %762 = vsyncadd (!%p662_p2), %s530_s11, 4294964224  ;;  %p13_p3 = scmp.ge.s32.totalorder %s828_s18, 8   ;;  %s989_s12 = smov %s769_s13 }
 0x11a   : > { %s990_s13 = smov %s773_s14  ;;  %s991_s14 = smov %s839_s21 }
 0x11b   : > { %s992_s15 = smov %s828_s18  ;;  %15 = sbr.rel (!%p13_p3) target bundleno = 3 (0x3), region = 67 }
 0x122   :  { %535 = vsyncpa [#allocation3], 1 }
 0x123   :  { %537 = vsyncpa [#allocation3 + $0x1], 1 }

</bundles_post_ra>
